<compile_context>
chip_gen: v7x
topology: tpu7x:2x2x1
jax: 0.10.0
libtpu: 0.0.40
codegen_flags: <defaults>
</compile_context>

<pallas_src>
import functools
import math

import jax
import jax.numpy as jnp
from jax.experimental import pallas as pl
from jax.experimental.pallas import tpu as pltpu

_HIDDEN = 64
_LANES = 128  # fused actor+critic hidden width == one full vreg lane width


def _round_up(x: int, m: int) -> int:
    return (x + m - 1) // m * m


def _fused_actor_critic_kernel(
    state_ref, w1_ref, b12_ref, w2_ref, w3_ref, b3_ref,
    out_ref,
    *, action_dim: int, compute_dtype,
):
    """One batch tile of the fused actor+critic MLP.

    Lane layout of the (TB, OUT) output slab (OUT is 8 for small A):
      lanes [0, A) : action_mean (tanh applied)
      lane  A      : state_value (linear head, no tanh)
      lanes > A    : zeros (padded w3/b3 columns)
    """
    f32 = jnp.float32

    x = state_ref[...]                                                # (TB, S)

    # layer 1: x @ [aw1 | cw1] + [ab1 | cb1]                          -> (TB, 128)
    h = jnp.tanh(jnp.dot(x, w1_ref[...], preferred_element_type=f32)
                 + b12_ref[0:1, :]).astype(compute_dtype)
    # layer 2: block-diag(aw2, cw2)                                   -> (TB, 128)
    h = jnp.tanh(jnp.dot(h, w2_ref[...], preferred_element_type=f32)
                 + b12_ref[1:2, :]).astype(compute_dtype)
    # layer 3 (kept in f32): aw3 -> lanes [0, A), cw3 -> lane A       -> (TB, OUT)
    h32 = h.astype(f32)
    y = jnp.dot(h32, w3_ref[...], preferred_element_type=f32) + b3_ref[...]

    col = jax.lax.broadcasted_iota(jnp.int32, y.shape, dimension=1)
    # tanh only the actor lanes; the critic value lane stays linear.
    out_ref[...] = jnp.where(col < action_dim, jnp.tanh(y), y)


def actor_critic_evaluate(state, action, params, action_var, *,
                          block_b: int = 2048, min_grid: int = 2,
                          compute_dtype=jnp.float32):
    """Pallas forward of ActorCritic.evaluate (continuous action space).

    Args:
      state:      (B, state_dim) f32.
      action:     (B, action_dim) f32.
      params:     dict of weights laid out (in_features, out_features).
      action_var: (action_dim,) f32 diagonal of the covariance.  Must be
                  strictly positive (matches PyTorch MultivariateNormal).
      block_b:    max batch tile size (rows per grid step).
      min_grid:   minimum number of grid steps for large batches (>=2 keeps
                  both TensorCores busy on v7x; negligible cost on v5e/v6e).
      compute_dtype: jnp.float32 or jnp.bfloat16 for the layer-1/2 matmuls.

    Returns:
      (action_mean (B, A), action_logprobs (B,), dist_entropy (B,),
       state_values (B, 1))
    """
    f32 = jnp.float32
    B, S = state.shape
    A = action.shape[1]
    H = _HIDDEN
    OUT = max(8, _round_up(A + 1, 8))      # mean lanes + value lane, 8-aligned
    assert 2 * H == _LANES

    # ---- Fuse actor + critic weights into lane-dense blocks. ----
    w1 = jnp.concatenate([params["aw1"], params["cw1"]], axis=1)          # (S, 128)
    b1 = jnp.concatenate([params["ab1"], params["cb1"]], axis=1)          # (1, 128)
    w2 = jnp.zeros((2 * H, 2 * H), f32)
    w2 = w2.at[:H, :H].set(params["aw2"]).at[H:, H:].set(params["cw2"])   # (128, 128)
    b2 = jnp.concatenate([params["ab2"], params["cb2"]], axis=1)          # (1, 128)
    b12 = jnp.concatenate([b1, b2], axis=0)                               # (2, 128)
    w3 = jnp.zeros((2 * H, OUT), f32)
    w3 = w3.at[:H, :A].set(params["aw3"]).at[H:, A:A + 1].set(params["cw3"])
    b3 = jnp.zeros((1, OUT), f32)
    b3 = b3.at[:, :A].set(params["ab3"]).at[:, A:A + 1].set(params["cb3"])

    # ---- Batch tiling. ----
    # bf16 activations need (16,128) min tiling -> 16-row-aligned tiles.
    sub = 8 if jnp.dtype(compute_dtype).itemsize >= 4 else 16
    TB = _round_up(max(1, min(block_b, B)), sub)
    if min_grid > 1 and B > sub:
        # Cap TB so large batches split into >= min_grid tiles (v7x megacore).
        TB = min(TB, max(sub, _round_up((B + min_grid - 1) // min_grid, sub)))
    B_pad = _round_up(B, TB)

    state_k = state
    if B_pad != B:
        state_k = jnp.pad(state_k, ((0, B_pad - B), (0, 0)))
    state_k = state_k.astype(compute_dtype)
    w1c = w1.astype(compute_dtype)
    w2c = w2.astype(compute_dtype)

    kernel = functools.partial(_fused_actor_critic_kernel,
                               action_dim=A, compute_dtype=compute_dtype)
    row_map = lambda i: (i, 0)    # batch-tiled operands
    const_map = lambda i: (0, 0)  # weights: DMA'd once, resident across tiles

    # VMEM per step at TB=2048: state tile + 8-lane out (double-buffered) plus
    # (TB,128) f32 internal temps ~= 2-3 MiB, far under all default limits.
    slab = pl.pallas_call(
        kernel,
        out_shape=jax.ShapeDtypeStruct((B_pad, OUT), f32),
        grid=(B_pad // TB,),
        in_specs=[
            pl.BlockSpec((TB, S), row_map),           # state tile
            pl.BlockSpec((S, 2 * H), const_map),      # fused W1
            pl.BlockSpec((2, 2 * H), const_map),      # fused b1 / b2
            pl.BlockSpec((2 * H, 2 * H), const_map),  # fused W2 (block-diag)
            pl.BlockSpec((2 * H, OUT), const_map),    # fused W3 (padded, f32)
            pl.BlockSpec((1, OUT), const_map),        # fused b3 (padded, f32)
        ],
        out_specs=pl.BlockSpec((TB, OUT), row_map),
        compiler_params=pltpu.CompilerParams(
            dimension_semantics=("parallel",),        # megacore sharding on v7x
        ),
    )(state_k, w1c, b12, w2c, w3, b3)

    slab = slab[:B]
    mean = slab[:, :A]
    value = slab[:, A:A + 1]

    # Diag-Gaussian log_prob / entropy in the wrapper (f32, trivially fused by
    # XLA; removes the padded action DMA stream from the kernel entirely).
    log_two_pi = math.log(2.0 * math.pi)
    sum_log_var = jnp.sum(jnp.log(action_var))
    diff = action - mean
    maha = jnp.sum(diff * diff / action_var[None, :], axis=-1)
    logp = -0.5 * maha - 0.5 * (A * log_two_pi + sum_log_var)
    ent = 0.5 * A * (1.0 + log_two_pi) + 0.5 * sum_log_var
    ent = jnp.broadcast_to(ent, (B,))
    return mean, logp, ent, value


def init_params(key, state_dim, action_dim, hidden=_HIDDEN):
    """PyTorch-Linear-style init: U(-1/sqrt(fan_in), 1/sqrt(fan_in))."""
    def linear(k, fan_in, fan_out):
        kw, kb = jax.random.split(k)
        bound = 1.0 / math.sqrt(fan_in)
        w = jax.random.uniform(kw, (fan_in, fan_out), jnp.float32, -bound, bound)
        b = jax.random.uniform(kb, (1, fan_out), jnp.float32, -bound, bound)
        return w, b

    keys = jax.random.split(key, 6)
    aw1, ab1 = linear(keys[0], state_dim, hidden)
    aw2, ab2 = linear(keys[1], hidden, hidden)
    aw3, ab3 = linear(keys[2], hidden, action_dim)
    cw1, cb1 = linear(keys[3], state_dim, hidden)
    cw2, cb2 = linear(keys[4], hidden, hidden)
    cw3, cb3 = linear(keys[5], hidden, 1)
    return dict(aw1=aw1, ab1=ab1, aw2=aw2, ab2=ab2, aw3=aw3, ab3=ab3,
                cw1=cw1, cb1=cb1, cw2=cw2, cb2=cb2, cw3=cw3, cb3=cb3)


def reference_evaluate(state, action, params, action_var):
    """Pure-JAX reference mirroring PyTorch ActorCritic.evaluate semantics."""
    h = jnp.tanh(state @ params["aw1"] + params["ab1"])
    h = jnp.tanh(h @ params["aw2"] + params["ab2"])
    mean = jnp.tanh(h @ params["aw3"] + params["ab3"])

    v = jnp.tanh(state @ params["cw1"] + params["cb1"])
    v = jnp.tanh(v @ params["cw2"] + params["cb2"])
    value = v @ params["cw3"] + params["cb3"]

    k = action.shape[-1]
    diff = action - mean
    logp = (-0.5 * jnp.sum(diff * diff / action_var, axis=-1)
            - 0.5 * k * math.log(2.0 * math.pi)
            - 0.5 * jnp.sum(jnp.log(action_var)))
    ent = (0.5 * k * (1.0 + math.log(2.0 * math.pi))
           + 0.5 * jnp.sum(jnp.log(action_var)))
    ent = jnp.broadcast_to(ent, logp.shape)
    return mean, logp, ent, value


# TODO(synk): ActorCritic.act() sampling (MultivariateNormal.sample) and the
# discrete Categorical branch are not implemented; only evaluate() is kernelized.

if __name__ == "__main__":
    B, STATE_DIM, ACTION_DIM = 8, 16, 4
    ACTION_STD_INIT = 0.6

    key = jax.random.PRNGKey(0)
    k_params, k_state, k_action, k_state2, k_action2 = jax.random.split(key, 5)

    params = init_params(k_params, STATE_DIM, ACTION_DIM)
    action_var = jnp.full((ACTION_DIM,), ACTION_STD_INIT * ACTION_STD_INIT,
                          dtype=jnp.float32)

    state = jax.random.normal(k_state, (B, STATE_DIM), jnp.float32)
    action = jax.random.normal(k_action, (B, ACTION_DIM), jnp.float32)

    eval_fn = jax.jit(actor_critic_evaluate,
                      static_argnames=("block_b", "min_grid", "compute_dtype"))

    # --- f32 path, single tile ---
    mean, logp, ent, value = eval_fn(state, action, params, action_var)
    jax.block_until_ready((mean, logp, ent, value))
    r_mean, r_logp, r_ent, r_value = reference_evaluate(state, action, params,
                                                        action_var)
    assert jnp.allclose(mean, r_mean, atol=1e-4), "action_mean mismatch"
    assert jnp.allclose(logp, r_logp, atol=1e-4), "log_prob mismatch"
    assert jnp.allclose(ent, r_ent, atol=1e-4), "entropy mismatch"
    assert jnp.allclose(value, r_value, atol=1e-4), "state_value mismatch"

    # --- f32 path, multi-tile grid with ragged batch (exercises padding) ---
    B2 = 100
    state2 = jax.random.normal(k_state2, (B2, STATE_DIM), jnp.float32)
    action2 = jax.random.normal(k_action2, (B2, ACTION_DIM), jnp.float32)
    mean2, logp2, ent2, value2 = eval_fn(state2, action2, params, action_var,
                                         block_b=32)
    jax.block_until_ready((mean2, logp2, ent2, value2))
    r2 = reference_evaluate(state2, action2, params, action_var)
    assert jnp.allclose(mean2, r2[0], atol=1e-4), "tiled action_mean mismatch"
    assert jnp.allclose(logp2, r2[1], atol=1e-4), "tiled log_prob mismatch"
    assert jnp.allclose(ent2, r2[2], atol=1e-4), "tiled entropy mismatch"
    assert jnp.allclose(value2, r2[3], atol=1e-4), "tiled state_value mismatch"

    # --- bf16 matmul path (layers 1/2); head + dist math stay f32 ---
    mean_b, logp_b, ent_b, value_b = eval_fn(state, action, params, action_var,
                                             compute_dtype=jnp.bfloat16)
    jax.block_until_ready((mean_b, logp_b, ent_b, value_b))
    assert jnp.allclose(mean_b, r_mean, atol=5e-2), "bf16 action_mean mismatch"
    assert jnp.allclose(value_b, r_value, atol=5e-2), "bf16 state_value mismatch"
    assert jnp.allclose(logp_b, r_logp, rtol=1e-1, atol=1e-1), "bf16 log_prob mismatch"
    assert jnp.allclose(ent_b, r_ent, atol=1e-5), "bf16 entropy mismatch"

    print("KERNEL_OK")
</pallas_src>

<mosaic_0001>
module attributes {stable_mosaic.version = 11 : i64} {
  func.func @_fused_actor_critic_kernel(%arg0: i32, %arg1: memref<8x16xf32, #tpu.memory_space<vmem>>, %arg2: memref<16x128xf32, #tpu.memory_space<vmem>>, %arg3: memref<2x128xf32, #tpu.memory_space<vmem>>, %arg4: memref<128x128xf32, #tpu.memory_space<vmem>>, %arg5: memref<128x8xf32, #tpu.memory_space<vmem>>, %arg6: memref<1x8xf32, #tpu.memory_space<vmem>>, %arg7: memref<8x8xf32, #tpu.memory_space<vmem>>) attributes {dimension_semantics = [#tpu.dimension_semantics<parallel>], iteration_bounds = array<i64: 1>, scalar_prefetch = 0 : i64, scratch_operands = 0 : i64, tpu.core_type = #tpu.core_type<tc>, window_params = [{transform_indices = @transform_0, window_bounds = array<i64: 8, 16>}, {pipeline_mode = #tpu.pipeline_mode<synchronous>, transform_indices = @transform_1, window_bounds = array<i64: 16, 128>}, {pipeline_mode = #tpu.pipeline_mode<synchronous>, transform_indices = @transform_2, window_bounds = array<i64: 2, 128>}, {pipeline_mode = #tpu.pipeline_mode<synchronous>, transform_indices = @transform_3, window_bounds = array<i64: 128, 128>}, {pipeline_mode = #tpu.pipeline_mode<synchronous>, transform_indices = @transform_4, window_bounds = array<i64: 128, 8>}, {pipeline_mode = #tpu.pipeline_mode<synchronous>, transform_indices = @transform_5, window_bounds = array<i64: 1, 8>}, {transform_indices = @transform_6, window_bounds = array<i64: 8, 8>}]} {
    %c0 = arith.constant 0 : index
    %c0_0 = arith.constant 0 : index
    %0 = vector.load %arg1[%c0, %c0_0] : memref<8x16xf32, #tpu.memory_space<vmem>>, vector<8x16xf32>
    %c0_1 = arith.constant 0 : index
    %c0_2 = arith.constant 0 : index
    %1 = vector.load %arg2[%c0_1, %c0_2] : memref<16x128xf32, #tpu.memory_space<vmem>>, vector<16x128xf32>
    %cst = arith.constant dense<0.000000e+00> : vector<8x128xf32>
    %2 = tpu.matmul %0, %1, %cst {dimension_numbers = #tpu.dot_dimension_numbers<[1], [0], [0], [1], [0, 0, 1, 1], [], []>} : vector<8x16xf32>, vector<16x128xf32>, vector<8x128xf32> -> vector<8x128xf32>
    %c0_3 = arith.constant 0 : index
    %c0_4 = arith.constant 0 : index
    %3 = vector.load %arg3[%c0_3, %c0_4] : memref<2x128xf32, #tpu.memory_space<vmem>>, vector<1x128xf32>
    %4 = vector.broadcast %3 : vector<1x128xf32> to vector<8x128xf32>
    %5 = arith.addf %2, %4 : vector<8x128xf32>
    %6 = math.tanh %5 : vector<8x128xf32>
    %c0_5 = arith.constant 0 : index
    %c0_6 = arith.constant 0 : index
    %7 = vector.load %arg4[%c0_5, %c0_6] : memref<128x128xf32, #tpu.memory_space<vmem>>, vector<128x128xf32>
    %cst_7 = arith.constant dense<0.000000e+00> : vector<8x128xf32>
    %8 = tpu.matmul %6, %7, %cst_7 {dimension_numbers = #tpu.dot_dimension_numbers<[1], [0], [0], [1], [0, 0, 1, 1], [], []>} : vector<8x128xf32>, vector<128x128xf32>, vector<8x128xf32> -> vector<8x128xf32>
    %c1 = arith.constant 1 : index
    %c0_8 = arith.constant 0 : index
    %9 = vector.load %arg3[%c1, %c0_8] : memref<2x128xf32, #tpu.memory_space<vmem>>, vector<1x128xf32>
    %10 = vector.broadcast %9 : vector<1x128xf32> to vector<8x128xf32>
    %11 = arith.addf %8, %10 : vector<8x128xf32>
    %12 = math.tanh %11 : vector<8x128xf32>
    %c0_9 = arith.constant 0 : index
    %c0_10 = arith.constant 0 : index
    %13 = vector.load %arg5[%c0_9, %c0_10] : memref<128x8xf32, #tpu.memory_space<vmem>>, vector<128x8xf32>
    %cst_11 = arith.constant dense<0.000000e+00> : vector<8x8xf32>
    %14 = tpu.matmul %12, %13, %cst_11 {dimension_numbers = #tpu.dot_dimension_numbers<[1], [0], [0], [1], [0, 0, 1, 1], [], []>} : vector<8x128xf32>, vector<128x8xf32>, vector<8x8xf32> -> vector<8x8xf32>
    %c0_12 = arith.constant 0 : index
    %c0_13 = arith.constant 0 : index
    %15 = vector.load %arg6[%c0_12, %c0_13] : memref<1x8xf32, #tpu.memory_space<vmem>>, vector<1x8xf32>
    %16 = vector.broadcast %15 : vector<1x8xf32> to vector<8x8xf32>
    %17 = arith.addf %14, %16 : vector<8x8xf32>
    %18 = tpu.iota {dimensions = array<i32: 1>} : vector<8x8xi32>
    %c4_i32 = arith.constant 4 : i32
    %19 = vector.broadcast %c4_i32 : i32 to vector<8x8xi32>
    %20 = arith.cmpi slt, %18, %19 : vector<8x8xi32>
    %21 = math.tanh %17 : vector<8x8xf32>
    %22 = arith.select %20, %21, %17 : vector<8x8xi1>, vector<8x8xf32>
    %c0_14 = arith.constant 0 : index
    %c0_15 = arith.constant 0 : index
    %23 = vector.load %arg7[%c0_14, %c0_15] : memref<8x8xf32, #tpu.memory_space<vmem>>, vector<8x8xf32>
    tpu.vector_store %arg7[%c0_14, %c0_15], %22 {strides = array<i32>} : memref<8x8xf32, #tpu.memory_space<vmem>>, vector<8x8xf32>,
    return
  }
  func.func @transform_0(%arg0: i32) -> (i32, i32) {
    %c0_i32 = arith.constant 0 : i32
    %c0_i32_0 = arith.constant 0 : i32
    return %arg0, %c0_i32 : i32, i32
  }
  func.func @transform_1(%arg0: i32) -> (i32, i32) {
    %c0_i32 = arith.constant 0 : i32
    %c0_i32_0 = arith.constant 0 : i32
    %c0_i32_1 = arith.constant 0 : i32
    return %c0_i32, %c0_i32_0 : i32, i32
  }
  func.func @transform_2(%arg0: i32) -> (i32, i32) {
    %c0_i32 = arith.constant 0 : i32
    %c0_i32_0 = arith.constant 0 : i32
    %c0_i32_1 = arith.constant 0 : i32
    return %c0_i32, %c0_i32_0 : i32, i32
  }
  func.func @transform_3(%arg0: i32) -> (i32, i32) {
    %c0_i32 = arith.constant 0 : i32
    %c0_i32_0 = arith.constant 0 : i32
    %c0_i32_1 = arith.constant 0 : i32
    return %c0_i32, %c0_i32_0 : i32, i32
  }
  func.func @transform_4(%arg0: i32) -> (i32, i32) {
    %c0_i32 = arith.constant 0 : i32
    %c0_i32_0 = arith.constant 0 : i32
    %c0_i32_1 = arith.constant 0 : i32
    return %c0_i32, %c0_i32_0 : i32, i32
  }
  func.func @transform_5(%arg0: i32) -> (i32, i32) {
    %c0_i32 = arith.constant 0 : i32
    %c0_i32_0 = arith.constant 0 : i32
    %c0_i32_1 = arith.constant 0 : i32
    return %c0_i32, %c0_i32_0 : i32, i32
  }
  func.func @transform_6(%arg0: i32) -> (i32, i32) {
    %c0_i32 = arith.constant 0 : i32
    %c0_i32_0 = arith.constant 0 : i32
    return %arg0, %c0_i32 : i32, i32
  }
}

</mosaic_0001>

<bundles_post_ra>
// kernel: actor_critic_evaluate.1
= control target key start
LH: loop header
LB: loop body
LE: loop exit
PB: predicated region body
PF: predicated region fallthrough
CT: control target
= control target key end

     0   :  { %v480_v0 = vmov 0.0|0.0   ;;  %vm481_vm0 = vmmov 0   ;;  %v482_v3 = vmov 0.0   ;;  %vm31_vm1 = vcmask 130048   ;;  %s655_s1 = inlined_call_operand.vmem [shape: f32[16,128], index: 1, kind: input, shape index: {}]   ;;  %s656_s3 = inlined_call_operand.vmem [shape: f32[128,128], index: 3, kind: input, shape index: {}]   ;;  %s657_s0 = inlined_call_operand.vmem [shape: f32[8,16], index: 0, kind: input, shape index: {}]   ;;  %s658_s4 = inlined_call_operand.vmem [shape: f32[128,8], index: 4, kind: input, shape index: {}]   ;;  %s659_s2 = inlined_call_operand.vmem [shape: f32[2,128], index: 2, kind: input, shape index: {}]   ;;  %s660_s5 = inlined_call_operand.vmem [shape: f32[1,8], index: 5, kind: input, shape index: {}]   ;;  %s661_s6 = inlined_call_operand.vmem [shape: f32[8,8], index: 6, kind: output, shape index: {}]  }
   0x1   :  { %420 = vmatprep.subr.bf16.mxu0 %v480_v0  ;;  %v24_v1 = vld [vmem:[%s655_s1] sm:$0xff]  ;;  %v25_v2 = vld [vmem:[%s655_s1 + $0x8] sm:$0xff]  ;;  %347 = vmatprep.mubr.msk.f32.mxu0 %vm481_vm0, %v482_v3  ;;  %v108_v7 = vld [vmem:[%s656_s3 + $0x10] sm:$0xff]  ;;  %vm296_vm3 = vcmask 64512  }
   0x2   :  { %v421_v4 = vpack.c.bf16 %v25_v2, %v24_v1  ;;  %423 = vmatprep.subr.bf16.mxu1 %v480_v0  ;;  %v106_v5 = vld [vmem:[%s656_s3] sm:$0xff]  ;;  %v107_v6 = vld [vmem:[%s656_s3 + $0x8] sm:$0xff]  ;;  %382 = vmatprep.mubr.msk.f32.mxu1 %vm481_vm0, %v482_v3  ;;  %v109_v9 = vld [vmem:[%s656_s3 + $0x18] sm:$0xff] }
   0x3   :  { %v424_v8 = vpack.c.bf16 %v107_v6, %v106_v5  ;;  %v23_v10 = vld [vmem:[%s657_s0] sm:$0xff]  ;;  %v427_v11 = vpack.c.bf16 %v109_v9, %v108_v7  ;;  %v111_v13 = vld [vmem:[%s656_s3 + $0x28] sm:$0xff]  ;;  %v112_v15 = vld [vmem:[%s656_s3 + $0x30] sm:$0xff]  ;;  %v291_v5 = vlaneseq }
   0x4   :  { %422 = vmatpush3.bf16.msra.mxu0 %v421_v4  ;;  %v110_v12 = vld [vmem:[%s656_s3 + $0x20] sm:$0xff]  ;;  %v113_v16 = vld [vmem:[%s656_s3 + $0x38] sm:$0xff]  ;;  %v115_v19 = vld [vmem:[%s656_s3 + $0x48] sm:$0xff] }
   0x5   :  { %425 = vmatpush3.bf16.msra.mxu1 %v424_v8  ;;  %447 = vmatprep.subr.bf16.mxu0 %v480_v0  ;;  %v430_v14 = vpack.c.bf16 %v111_v13, %v110_v12  ;;  %v433_v17 = vpack.c.bf16 %v113_v16, %v112_v15  ;;  %v114_v18 = vld [vmem:[%s656_s3 + $0x40] sm:$0xff]  ;;  %v116_v21 = vld [vmem:[%s656_s3 + $0x50] sm:$0xff]  ;;  %v117_v22 = vld [vmem:[%s656_s3 + $0x58] sm:$0xff] }
   0x6   :  { %426 = vmatprep.subr.bf16.mxu1 %v480_v0  ;;  %v436_v20 = vpack.c.bf16 %v115_v19, %v114_v18  ;;  %v439_v23 = vpack.c.bf16 %v117_v22, %v116_v21  ;;  %v118_v24 = vld [vmem:[%s656_s3 + $0x60] sm:$0xff]  ;;  %v119_v25 = vld [vmem:[%s656_s3 + $0x68] sm:$0xff]  ;;  %v120_v27 = vld [vmem:[%s656_s3 + $0x70] sm:$0xff] }
   0x7   :  { %348 = vmatmul.mubr.msk.f32.vlgmr.msra.gmra.mrb[0].mxu0 %vm31_vm1, %v23_v10  ;;  %v442_v26 = vpack.c.bf16 %v119_v25, %v118_v24  ;;  %v121_v28 = vld [vmem:[%s656_s3 + $0x78] sm:$0xff]  ;;  %v198_v30 = vld [vmem:[%s658_s4] sm:$0xff]  ;;  %v199_v31 = vld [vmem:[%s658_s4 + $0x8] sm:$0xff] }
   0x8   :  { %417 = vmatprep.mubr.msk.f32.mxu0 %vm481_vm0, %v482_v3  ;;  %v445_v29 = vpack.c.bf16 %v121_v28, %v120_v27  ;;  %v200_v32 = vld [vmem:[%s658_s4 + $0x10] sm:$0xff]  ;;  %v448_v33 = vpack.c.bf16 %v199_v31, %v198_v30  ;;  %v201_v34 = vld [vmem:[%s658_s4 + $0x18] sm:$0xff]  ;;  %v202_v36 = vld [vmem:[%s658_s4 + $0x20] sm:$0xff] }
   0x9   :  { %428 = vmatpush3.bf16.msra.mxu1 %v427_v11  ;;  %v451_v35 = vpack.c.bf16 %v201_v34, %v200_v32  ;;  %v203_v37 = vld [vmem:[%s658_s4 + $0x28] sm:$0xff]  ;;  %v204_v39 = vld [vmem:[%s658_s4 + $0x30] sm:$0xff]  ;;  %v205_v40 = vld [vmem:[%s658_s4 + $0x38] sm:$0xff] }
   0xa   :  { %429 = vmatprep.subr.bf16.mxu1 %v480_v0  ;;  %449 = vmatpush3.bf16.msra.mxu0 %v448_v33  ;;  %v454_v38 = vpack.c.bf16 %v203_v37, %v202_v36  ;;  %v457_v41 = vpack.c.bf16 %v205_v40, %v204_v39  ;;  %v206_v42 = vld [vmem:[%s658_s4 + $0x40] sm:$0xff]  ;;  %v207_v43 = vld [vmem:[%s658_s4 + $0x48] sm:$0xff]  ;;  %v208_v50 = vld [vmem:[%s658_s4 + $0x50] sm:$0xff] }
   0xb   :  { %450 = vmatprep.subr.bf16.mxu0 %v480_v0  ;;  %v460_v44 = vpack.c.bf16 %v207_v43, %v206_v42  ;;  %v302_v45 = vld [vmem:[%s659_s2] ss:$0 sm:$0xff]  ;;  %v209_v51 = vld [vmem:[%s658_s4 + $0x58] sm:$0xff]  ;;  %v211_v54 = vld [vmem:[%s658_s4 + $0x68] sm:$0xff] }
   0xc   :  { %v463_v52 = vpack.c.bf16 %v209_v51, %v208_v50  ;;  %v210_v53 = vld [vmem:[%s658_s4 + $0x60] sm:$0xff]  ;;  %v212_v56 = vld [vmem:[%s658_s4 + $0x70] sm:$0xff]  ;;  %v213_v57 = vld [vmem:[%s658_s4 + $0x78] sm:$0xff] }
   0xd   :  { %431 = vmatpush3.bf16.msra.mxu1 %v430_v14  ;;  %v466_v55 = vpack.c.bf16 %v211_v54, %v210_v53  ;;  %v469_v58 = vpack.c.bf16 %v213_v57, %v212_v56  ;;  %v304_v59 = vld [vmem:[%s659_s2 + $0x1] ss:$0 sm:$0xff]  ;;  %v305_v1 = vld [vmem:[%s660_s5] ss:$0 sm:$0xff] }
   0xe   :  { %432 = vmatprep.subr.bf16.mxu1 %v480_v0  ;;  %452 = vmatpush3.bf16.msra.mxu0 %v451_v35 }
   0xf   :  { %453 = vmatprep.subr.bf16.mxu0 %v480_v0 }
  0x11   :  { %434 = vmatpush3.bf16.msra.mxu1 %v433_v17 }
  0x12   :  { %435 = vmatprep.subr.bf16.mxu1 %v480_v0  ;;  %455 = vmatpush3.bf16.msra.mxu0 %v454_v38 }
  0x13   :  { %456 = vmatprep.subr.bf16.mxu0 %v480_v0 }
  0x15   :  { %437 = vmatpush3.bf16.msra.mxu1 %v436_v20 }
  0x16   :  { %438 = vmatprep.subr.bf16.mxu1 %v480_v0  ;;  %458 = vmatpush3.bf16.msra.mxu0 %v457_v41 }
  0x17   :  { %459 = vmatprep.subr.bf16.mxu0 %v480_v0 }
  0x19   :  { %440 = vmatpush3.bf16.msra.mxu1 %v439_v23 }
  0x1a   :  { %441 = vmatprep.subr.bf16.mxu1 %v480_v0  ;;  %461 = vmatpush3.bf16.msra.mxu0 %v460_v44 }
  0x1b   :  { %462 = vmatprep.subr.bf16.mxu0 %v480_v0 }
  0x1d   :  { %443 = vmatpush3.bf16.msra.mxu1 %v442_v26 }
  0x1e   :  { %444 = vmatprep.subr.bf16.mxu1 %v480_v0  ;;  %464 = vmatpush3.bf16.msra.mxu0 %v463_v52 }
  0x1f   :  { %465 = vmatprep.subr.bf16.mxu0 %v480_v0 }
  0x21   :  { %446 = vmatpush3.bf16.msra.mxu1 %v445_v29 }
  0x22   :  { %467 = vmatpush3.bf16.msra.mxu0 %v466_v55 }
  0x23   :  { %468 = vmatprep.subr.bf16.mxu0 %v480_v0  ;;  %v292_v0 = vand.u32 127, %v291_v5 }
  0x25   :  { %vm293_vm2 = vcmp.lt.s32.totalorder %v292_v0, 4 }
  0x26   :  { %470 = vmatpush3.bf16.msra.mxu0 %v469_v58 }
  0xda   :  { %v101_v46 = vpop.f32.mrb[0].mxu0 }
  0xdb   :  { %v102_v47 = vadd.f32 %v302_v45, %v101_v46  ;;  %v349_v48 = vpop.f32.mrb[1].mxu0 }
  0xdd   :  { %474 = vtanh.f32 %v102_v47 }
  0xe7   :  { %v475_v49 = vpop.eup %474 }
  0xe8   :  { %383 = vmatmul.mubr.f32.vlgmr.msra.gmra.mrb[0].mxu1 %v475_v49 }
 0x1bb   :  { %v193_v60 = vpop.f32.mrb[0].mxu1 }
 0x1bc   :  { %v194_v61 = vadd.f32 %v304_v59, %v193_v60  ;;  %v384_v62 = vpop.f32.mrb[1].mxu1 }
 0x1be   :  { %476 = vtanh.f32 %v194_v61 }
 0x1c8   :  { %v477_v63 = vpop.eup %476 }
 0x1c9   :  { %418 = vmatmul.mubr.f32.vlgmr.msra.gmra.mrb[2].mxu0 %v477_v63 }
 0x29c   :  { %v287_v2 = vpop.f32.mrb[2].mxu0 }
 0x29d   :  { %v288_v3 = vadd.f32 %v305_v1, %v287_v2  ;;  %v419_v4 = vpop.f32.mrb[3].mxu0 }
 0x29f   :  { %478 = vtanh.f32 %v288_v3 }
 0x2a9   :  { %v479_v6 = vpop.eup %478 }
 0x2aa   :  { %v295_v7 = vsel %vm293_vm2, %v479_v6, %v288_v3 }
 0x2ab   :  { %297 = vst.msk [vmem:[%s661_s6] sm:$0xff] %vm296_vm3, %v295_v7 }

</bundles_post_ra>
